<compile_context>
chip_gen: v6e
topology: v6e:2x2x1
jax: 0.10.0
libtpu: 0.0.40
codegen_flags: <defaults>
</compile_context>

<pallas_src>
import jax
import jax.numpy as jnp
from jax import lax
from jax.experimental import pallas as pl
from jax.experimental.pallas import tpu as pltpu


def gg_dot_brownian(t):
    # gamma(t) = sqrt(t(1-t))  =>  gamma(t) * gamma_dot(t) = (1 - 2t) / 2
    return 0.5 * (1.0 - 2.0 * t)


def _make_kernel(d, lane_chunk):
    """Kernel factory (d and the inner lane-chunk size are static)."""

    def kernel(xT_ref, w1x_ref, b1_ref, w2_ref, c_ref, bias_ref, out_ref):
        tb = xT_ref.shape[1]
        n_chunks = tb // lane_chunk                     # static python int

        # Tiny resident weights: load once per grid step, live in vregs.
        w1x = w1x_ref[...]          # (H, d)    mxu dtype
        b1 = b1_ref[...]            # (H, 1)    f32, = b1 + t * w1t
        w2 = w2_ref[...]            # (d, H)    mxu dtype, = gg_dot(t) * W2
        c = c_ref[...]              # (1, H)    mxu dtype, = gg_dot(t) * c0
        bias = bias_ref[...]        # (d+1, 1)  f32: [:d]=gg_dot*b2, [d]=-sum(c)

        def chunk(ci, carry):
            col = pl.multiple_of(ci * lane_chunk, lane_chunk)
            cols = pl.ds(col, lane_chunk)

            xc = xT_ref[:, cols]                                     # (d, CH)
            # hidden pre-activation, batch on lanes (lane-dense)
            h = jnp.dot(w1x, xc.astype(w1x.dtype),
                        preferred_element_type=jnp.float32) + b1     # (H, CH)
            u = jnp.tanh(h)                                          # (H, CH) f32

            # velocity rows (gg_dot folded into w2/bias)
            v = jnp.dot(w2, u.astype(w2.dtype),
                        preferred_element_type=jnp.float32)          # (d, CH)
            # -div = c @ u^2 - sum(c)   (sum(c) folded into bias row d)
            nd = jnp.dot(c, (u * u).astype(c.dtype),
                         preferred_element_type=jnp.float32)         # (1, CH)

            out_ref[0:d, cols] = (v + bias[0:d]).astype(out_ref.dtype)
            out_ref[d:d + 1, cols] = (nd + bias[d:d + 1]).astype(out_ref.dtype)
            return carry

        # Short trip counts fully unrolled for LLO visibility; long ones looped.
        lax.fori_loop(0, n_chunks, chunk, None, unroll=(n_chunks <= 8))

    return kernel


def mirror_pflow_rhs_feature_major(t, xT, params, *, gg_dot=gg_dot_brownian,
                                   tb=None, lane_chunk=512,
                                   mxu_dtype=jnp.float32):
    """Feature-major MirrorPFlowRHS: no wrapper-side layout passes.

    xT: (d, bs) f32 (x transposed; batch on the lane axis).
    Returns one lane-dense (d+1, bs) f32 array:
        rows 0..d-1 :  gg_dot(t) * s(x, t)      (rhs, transposed)
        row  d      : -div_x [gg_dot(t) * s(x, t)]
    i.e. exactly the time-derivative of the augmented (x, log-density) state.
    """
    d, bs = xT.shape
    w1x, w1t, b1, w2, b2 = (params["w1x"], params["w1t"], params["b1"],
                            params["w2"], params["b2"])
    H = w1x.shape[0]

    assert lane_chunk % 128 == 0, "lane_chunk must be a multiple of 128"
    if tb is None:
        # Big tiles amortize the ~0.35us per-grid-step overhead; cap so that a
        # large batch still gives >=~8 "parallel" grid steps (megacore / v7x).
        # Lane-dense (d,TB)/(d+1,TB) blocks cost only ~32*TB bytes of VMEM each,
        # so TB in the 16K-64K range is safe on every generation (incl. v7x's
        # 64 MiB VMEM / v5e's 16 MiB default scoped limit).
        tb = max(lane_chunk, min(32768, lane_chunk * pl.cdiv(bs, 8 * lane_chunk)))
    tb = int(tb)
    assert tb % lane_chunk == 0, "tb must be a multiple of lane_chunk"

    t_arr = jnp.asarray(t, jnp.float32)
    scale = gg_dot(t_arr)                             # scalar, x-independent

    # Parameter glue, O(H*d) once per call (not per batch element):
    #   fold t into the first-layer bias, gg_dot(t) into the second layer and
    #   the divergence contraction vector, and -sum(c) into the output bias.
    b1_eff = (b1 + t_arr * w1t).reshape(H, 1).astype(jnp.float32)
    w2_eff = scale * w2                                              # (d, H)
    c_f32 = scale * jnp.sum(w2 * w1x.T, axis=0)                      # (H,)
    bias_eff = jnp.concatenate(
        [scale * b2, -jnp.sum(c_f32)[None]]).reshape(d + 1, 1).astype(jnp.float32)

    w1x_m = w1x.astype(mxu_dtype)
    w2_m = w2_eff.astype(mxu_dtype)
    c_m = c_f32.reshape(1, H).astype(mxu_dtype)

    grid = (pl.cdiv(bs, tb),)                         # no padding: edge block masked
    resident = lambda shp: pl.BlockSpec(shp, lambda i: (0, 0))

    cost = pl.CostEstimate(
        flops=int(bs * (4 * H * d + 3 * H)),
        transcendentals=int(bs * H),
        bytes_accessed=int(4 * (bs * (2 * d + 1) + 2 * H * d + 2 * H + d + 1)),
    )

    out = pl.pallas_call(
        _make_kernel(d, lane_chunk),
        out_shape=jax.ShapeDtypeStruct((d + 1, bs), jnp.float32),
        grid=grid,
        in_specs=[pl.BlockSpec((d, tb), lambda i: (0, i)),   # x^T batch tile
                  resident((H, d)),                          # W1x        (resident)
                  resident((H, 1)),                          # b1 + t*w1t (resident)
                  resident((d, H)),                          # gg_dot*W2  (resident)
                  resident((1, H)),                          # gg_dot*c0  (resident)
                  resident((d + 1, 1))],                     # [gg_dot*b2; -sum c]
        out_specs=pl.BlockSpec((d + 1, tb), lambda i: (0, i)),
        compiler_params=pltpu.CompilerParams(
            dimension_semantics=("parallel",),
            # double-buffered x + out blocks (8 padded sublanes each) + margin
            vmem_limit_bytes=int(128 * tb + (8 << 20))),
        cost_estimate=cost,
    )(xT.astype(jnp.float32), w1x_m, b1_eff, w2_m, c_m, bias_eff)

    return out


def mirror_pflow_rhs_forward(t, x, params, *, sample_only=False, **kwargs):
    """Drop-in layout parity with MirrorPFlowRHS.forward(t, (x,)).

    x: (bs, d) f32  ->  (rhs (bs, d), -div (bs,)).
    Matching the PyTorch (bs, d) layout costs one HBM transpose each way;
    callers that can keep the ODE state feature-major should use
    `mirror_pflow_rhs_feature_major` directly (review option (a)).
    """
    bs, d = x.shape
    out = mirror_pflow_rhs_feature_major(t, x.T, params, **kwargs)   # (d+1, bs)
    v = out[:d].T
    if sample_only:
        # module's sample_only path: divergence replaced by zeros
        return v, jnp.zeros((bs,), v.dtype)
    return v, out[d]


def _reference(t, x, params, gg_dot=gg_dot_brownian):
    """Pure-JAX reference: rhs = gg_dot(t)*s(x,t); divergence via per-sample Jacobian."""
    w1x, w1t, b1, w2, b2 = (params["w1x"], params["w1t"], params["b1"],
                            params["w2"], params["b2"])

    def rhs_single(xi):
        h = w1x @ xi + w1t * t + b1
        return gg_dot(t) * (w2 @ jnp.tanh(h) + b2)

    v = jax.vmap(rhs_single)(x)
    neg_div = -jax.vmap(lambda xi: jnp.trace(jax.jacfwd(rhs_single)(xi)))(x)
    return v, neg_div


if __name__ == "__main__":
    key = jax.random.PRNGKey(0)
    bs, d, H = 800, 4, 32      # bs deliberately NOT a multiple of the tile

    k1, k2, k3, k4, k5, k6 = jax.random.split(key, 6)
    params = {
        # velocity net s: Linear(d+1 -> H) split into x-part / t-part, then Linear(H -> d)
        "w1x": jax.random.normal(k1, (H, d), jnp.float32) / jnp.sqrt(d + 1.0),
        "w1t": jax.random.normal(k2, (H,), jnp.float32) / jnp.sqrt(d + 1.0),
        "b1":  jax.random.normal(k3, (H,), jnp.float32) * 0.1,
        "w2":  jax.random.normal(k4, (d, H), jnp.float32) / jnp.sqrt(float(H)),
        "b2":  jax.random.normal(k5, (d,), jnp.float32) * 0.1,
    }
    x = jax.random.normal(k6, (bs, d), jnp.float32)
    t = jnp.float32(0.37)

    # tb=512, lane_chunk=256 -> 2 grid steps (2nd one partial / masked) and
    # 2 inner lane chunks per step: exercises tiling, masking and the chunk loop.
    v, neg_div = mirror_pflow_rhs_forward(t, x, params, tb=512, lane_chunk=256)
    jax.block_until_ready((v, neg_div))

    # Recommended feature-major entry (no wrapper transposes): same numbers.
    out_fm = mirror_pflow_rhs_feature_major(t, x.T, params, tb=512, lane_chunk=256)
    jax.block_until_ready(out_fm)

    v_ref, neg_div_ref = _reference(t, x, params)
    assert v.shape == (bs, d) and neg_div.shape == (bs,)
    assert jnp.allclose(v, v_ref, atol=1e-4, rtol=1e-4), \
        float(jnp.max(jnp.abs(v - v_ref)))
    assert jnp.allclose(neg_div, neg_div_ref, atol=1e-4, rtol=1e-4), \
        float(jnp.max(jnp.abs(neg_div - neg_div_ref)))
    assert jnp.allclose(out_fm[:d].T, v_ref, atol=1e-4, rtol=1e-4)
    assert jnp.allclose(out_fm[d], neg_div_ref, atol=1e-4, rtol=1e-4)

    print("KERNEL_OK")
</pallas_src>

<mosaic_0001>
module attributes {stable_mosaic.version = 11 : i64} {
  func.func @kernel(%arg0: i32, %arg1: memref<4x512xf32, #tpu.memory_space<vmem>>, %arg2: memref<32x4xf32, #tpu.memory_space<vmem>>, %arg3: memref<32x1xf32, #tpu.memory_space<vmem>>, %arg4: memref<4x32xf32, #tpu.memory_space<vmem>>, %arg5: memref<1x32xf32, #tpu.memory_space<vmem>>, %arg6: memref<5x1xf32, #tpu.memory_space<vmem>>, %arg7: memref<5x512xf32, #tpu.memory_space<vmem>>) attributes {dimension_semantics = [#tpu.dimension_semantics<parallel>], iteration_bounds = array<i64: 2>, scalar_prefetch = 0 : i64, scratch_operands = 0 : i64, tpu.core_type = #tpu.core_type<tc>, window_params = [{transform_indices = @transform_0, window_bounds = array<i64: 4, 512>}, {pipeline_mode = #tpu.pipeline_mode<synchronous>, transform_indices = @transform_1, window_bounds = array<i64: 32, 4>}, {pipeline_mode = #tpu.pipeline_mode<synchronous>, transform_indices = @transform_2, window_bounds = array<i64: 32, 1>}, {pipeline_mode = #tpu.pipeline_mode<synchronous>, transform_indices = @transform_3, window_bounds = array<i64: 4, 32>}, {pipeline_mode = #tpu.pipeline_mode<synchronous>, transform_indices = @transform_4, window_bounds = array<i64: 1, 32>}, {pipeline_mode = #tpu.pipeline_mode<synchronous>, transform_indices = @transform_5, window_bounds = array<i64: 5, 1>}, {transform_indices = @transform_6, window_bounds = array<i64: 5, 512>}]} {
    %c0 = arith.constant 0 : index
    %c0_0 = arith.constant 0 : index
    %0 = vector.load %arg2[%c0, %c0_0] : memref<32x4xf32, #tpu.memory_space<vmem>>, vector<32x4xf32>
    %c0_1 = arith.constant 0 : index
    %c0_2 = arith.constant 0 : index
    %1 = vector.load %arg3[%c0_1, %c0_2] : memref<32x1xf32, #tpu.memory_space<vmem>>, vector<32x1xf32>
    %c0_3 = arith.constant 0 : index
    %c0_4 = arith.constant 0 : index
    %2 = vector.load %arg4[%c0_3, %c0_4] : memref<4x32xf32, #tpu.memory_space<vmem>>, vector<4x32xf32>
    %c0_5 = arith.constant 0 : index
    %c0_6 = arith.constant 0 : index
    %3 = vector.load %arg5[%c0_5, %c0_6] : memref<1x32xf32, #tpu.memory_space<vmem>>, vector<1x32xf32>
    %c0_7 = arith.constant 0 : index
    %c0_8 = arith.constant 0 : index
    %4 = vector.load %arg6[%c0_7, %c0_8] : memref<5x1xf32, #tpu.memory_space<vmem>>, vector<5x1xf32>
    %c0_i32 = arith.constant 0 : i32
    %c256_i32 = arith.constant 256 : i32
    %5 = arith.muli %c0_i32, %c256_i32 : i32
    %6 = tpu.assume_multiple %5, 256 : i32
    %c0_9 = arith.constant 0 : index
    %7 = arith.index_cast %6 : i32 to index
    %8 = vector.load %arg1[%c0_9, %7] : memref<4x512xf32, #tpu.memory_space<vmem>>, vector<4x256xf32>
    %cst = arith.constant dense<0.000000e+00> : vector<32x256xf32>
    %9 = tpu.matmul %0, %8, %cst {dimension_numbers = #tpu.dot_dimension_numbers<[1], [0], [0], [1], [0, 0, 1, 1], [], []>} : vector<32x4xf32>, vector<4x256xf32>, vector<32x256xf32> -> vector<32x256xf32>
    %10 = vector.broadcast %1 : vector<32x1xf32> to vector<32x256xf32>
    %11 = arith.addf %9, %10 : vector<32x256xf32>
    %12 = math.tanh %11 : vector<32x256xf32>
    %cst_10 = arith.constant dense<0.000000e+00> : vector<4x256xf32>
    %13 = tpu.matmul %2, %12, %cst_10 {dimension_numbers = #tpu.dot_dimension_numbers<[1], [0], [0], [1], [0, 0, 1, 1], [], []>} : vector<4x32xf32>, vector<32x256xf32>, vector<4x256xf32> -> vector<4x256xf32>
    %14 = arith.mulf %12, %12 : vector<32x256xf32>
    %cst_11 = arith.constant dense<0.000000e+00> : vector<1x256xf32>
    %15 = tpu.matmul %3, %14, %cst_11 {dimension_numbers = #tpu.dot_dimension_numbers<[1], [0], [0], [1], [0, 0, 1, 1], [], []>} : vector<1x32xf32>, vector<32x256xf32>, vector<1x256xf32> -> vector<1x256xf32>
    %16 = vector.extract_strided_slice %4 {offsets = [0, 0], sizes = [4, 1], strides = [1, 1]} : vector<5x1xf32> to vector<4x1xf32>
    %17 = vector.broadcast %16 : vector<4x1xf32> to vector<4x256xf32>
    %18 = arith.addf %13, %17 : vector<4x256xf32>
    %c0_12 = arith.constant 0 : index
    %19 = arith.index_cast %6 : i32 to index
    %20 = vector.load %arg7[%c0_12, %19] : memref<5x512xf32, #tpu.memory_space<vmem>>, vector<4x256xf32>
    tpu.vector_store %arg7[%c0_12, %19], %18 {strides = array<i32>} : memref<5x512xf32, #tpu.memory_space<vmem>>, vector<4x256xf32>,
    %21 = vector.extract_strided_slice %4 {offsets = [4, 0], sizes = [1, 1], strides = [1, 1]} : vector<5x1xf32> to vector<1x1xf32>
    %22 = vector.broadcast %21 : vector<1x1xf32> to vector<1x256xf32>
    %23 = arith.addf %15, %22 : vector<1x256xf32>
    %c4 = arith.constant 4 : index
    %24 = arith.index_cast %6 : i32 to index
    %25 = vector.load %arg7[%c4, %24] : memref<5x512xf32, #tpu.memory_space<vmem>>, vector<1x256xf32>
    tpu.vector_store %arg7[%c4, %24], %23 {strides = array<i32>} : memref<5x512xf32, #tpu.memory_space<vmem>>, vector<1x256xf32>,
    %c1_i32 = arith.constant 1 : i32
    %c256_i32_13 = arith.constant 256 : i32
    %26 = arith.muli %c1_i32, %c256_i32_13 : i32
    %27 = tpu.assume_multiple %26, 256 : i32
    %c0_14 = arith.constant 0 : index
    %28 = arith.index_cast %27 : i32 to index
    %29 = vector.load %arg1[%c0_14, %28] : memref<4x512xf32, #tpu.memory_space<vmem>>, vector<4x256xf32>
    %cst_15 = arith.constant dense<0.000000e+00> : vector<32x256xf32>
    %30 = tpu.matmul %0, %29, %cst_15 {dimension_numbers = #tpu.dot_dimension_numbers<[1], [0], [0], [1], [0, 0, 1, 1], [], []>} : vector<32x4xf32>, vector<4x256xf32>, vector<32x256xf32> -> vector<32x256xf32>
    %31 = vector.broadcast %1 : vector<32x1xf32> to vector<32x256xf32>
    %32 = arith.addf %30, %31 : vector<32x256xf32>
    %33 = math.tanh %32 : vector<32x256xf32>
    %cst_16 = arith.constant dense<0.000000e+00> : vector<4x256xf32>
    %34 = tpu.matmul %2, %33, %cst_16 {dimension_numbers = #tpu.dot_dimension_numbers<[1], [0], [0], [1], [0, 0, 1, 1], [], []>} : vector<4x32xf32>, vector<32x256xf32>, vector<4x256xf32> -> vector<4x256xf32>
    %35 = arith.mulf %33, %33 : vector<32x256xf32>
    %cst_17 = arith.constant dense<0.000000e+00> : vector<1x256xf32>
    %36 = tpu.matmul %3, %35, %cst_17 {dimension_numbers = #tpu.dot_dimension_numbers<[1], [0], [0], [1], [0, 0, 1, 1], [], []>} : vector<1x32xf32>, vector<32x256xf32>, vector<1x256xf32> -> vector<1x256xf32>
    %37 = vector.extract_strided_slice %4 {offsets = [0, 0], sizes = [4, 1], strides = [1, 1]} : vector<5x1xf32> to vector<4x1xf32>
    %38 = vector.broadcast %37 : vector<4x1xf32> to vector<4x256xf32>
    %39 = arith.addf %34, %38 : vector<4x256xf32>
    %c0_18 = arith.constant 0 : index
    %40 = arith.index_cast %27 : i32 to index
    %41 = vector.load %arg7[%c0_18, %40] : memref<5x512xf32, #tpu.memory_space<vmem>>, vector<4x256xf32>
    tpu.vector_store %arg7[%c0_18, %40], %39 {strides = array<i32>} : memref<5x512xf32, #tpu.memory_space<vmem>>, vector<4x256xf32>,
    %42 = vector.extract_strided_slice %4 {offsets = [4, 0], sizes = [1, 1], strides = [1, 1]} : vector<5x1xf32> to vector<1x1xf32>
    %43 = vector.broadcast %42 : vector<1x1xf32> to vector<1x256xf32>
    %44 = arith.addf %36, %43 : vector<1x256xf32>
    %c4_19 = arith.constant 4 : index
    %45 = arith.index_cast %27 : i32 to index
    %46 = vector.load %arg7[%c4_19, %45] : memref<5x512xf32, #tpu.memory_space<vmem>>, vector<1x256xf32>
    tpu.vector_store %arg7[%c4_19, %45], %44 {strides = array<i32>} : memref<5x512xf32, #tpu.memory_space<vmem>>, vector<1x256xf32>,
    %c2_i32 = arith.constant 2 : i32
    return
  }
  func.func @transform_0(%arg0: i32) -> (i32, i32) {
    %c0_i32 = arith.constant 0 : i32
    %c0_i32_0 = arith.constant 0 : i32
    return %c0_i32, %arg0 : i32, i32
  }
  func.func @transform_1(%arg0: i32) -> (i32, i32) {
    %c0_i32 = arith.constant 0 : i32
    %c0_i32_0 = arith.constant 0 : i32
    %c0_i32_1 = arith.constant 0 : i32
    return %c0_i32, %c0_i32_0 : i32, i32
  }
  func.func @transform_2(%arg0: i32) -> (i32, i32) {
    %c0_i32 = arith.constant 0 : i32
    %c0_i32_0 = arith.constant 0 : i32
    %c0_i32_1 = arith.constant 0 : i32
    return %c0_i32, %c0_i32_0 : i32, i32
  }
  func.func @transform_3(%arg0: i32) -> (i32, i32) {
    %c0_i32 = arith.constant 0 : i32
    %c0_i32_0 = arith.constant 0 : i32
    %c0_i32_1 = arith.constant 0 : i32
    return %c0_i32, %c0_i32_0 : i32, i32
  }
  func.func @transform_4(%arg0: i32) -> (i32, i32) {
    %c0_i32 = arith.constant 0 : i32
    %c0_i32_0 = arith.constant 0 : i32
    %c0_i32_1 = arith.constant 0 : i32
    return %c0_i32, %c0_i32_0 : i32, i32
  }
  func.func @transform_5(%arg0: i32) -> (i32, i32) {
    %c0_i32 = arith.constant 0 : i32
    %c0_i32_0 = arith.constant 0 : i32
    %c0_i32_1 = arith.constant 0 : i32
    return %c0_i32, %c0_i32_0 : i32, i32
  }
  func.func @transform_6(%arg0: i32) -> (i32, i32) {
    %c0_i32 = arith.constant 0 : i32
    %c0_i32_0 = arith.constant 0 : i32
    return %c0_i32, %arg0 : i32, i32
  }
}

</mosaic_0001>

<bundles_post_ra>
// kernel: tpu_custom_call.1
= control target key start
LH: loop header
LB: loop body
LE: loop exit
PB: predicated region body
PF: predicated region fallthrough
CT: control target
= control target key end

     0   :  { %11 = vsyncpa [#allocation3], 0  ;;  %s1375_s0 = inlined_call_operand.vmem [shape: f32[4,800], index: 0, kind: input, shape index: {}]   ;;  %s1376_s1 = inlined_call_operand.vmem [shape: f32[32,4], index: 1, kind: input, shape index: {}]   ;;  %s1377_s2 = inlined_call_operand.vmem [shape: f32[32,1], index: 2, kind: input, shape index: {}]   ;;  %s1378_s3 = inlined_call_operand.vmem [shape: f32[4,32], index: 3, kind: input, shape index: {}]   ;;  %s1379_s4 = inlined_call_operand.vmem [shape: f32[1,32], index: 4, kind: input, shape index: {}]   ;;  %s1380_s5 = inlined_call_operand.vmem [shape: f32[5,1], index: 5, kind: input, shape index: {}]   ;;  %s1381_s6 = inlined_call_operand.hbm [shape: f32[5,800], index: 6, kind: output, shape index: {}]  }
   0x1   :  { %13 = vsyncpa [#allocation3 + $0x1], 0  ;;  %s1193_s21 = smov 0   ;;  %s1195_s22 = smov 0  }
   0x2   :  { %s1197_s23 = smov 0   ;;  %s1199_s24 = smov 0  }
   0x3 LB: > { %s1214_s25 = sadd.s32 4294967295, %s1152_s24   ;;  %s977_s26 = sadd.s32 4294967294, %s1152_s24   ;;  %s1152_s24 = sphi %s1199_s24, %s1389_s24   ;;  %s1148_s23 = sphi %s1197_s23, %s1388_s23   ;;  %s1144_s22 = sphi %s1195_s22, %s1387_s22   ;;  %s1140_s21 = sphi %s1193_s21, %s1386_s21  }
   0x4   : > { %s1218_s27 = sadd.s32 1, %s1152_s24   ;;  %s157_s28 = sadd.s32 1, %s1148_s23 }
   0x5   : > { %s154_s29 = ssub.s32 %s1152_s24, %s1218_s27  ;;  %p167_p0 = scmp.ne.s32.totalorder %s1148_s23, %s1144_s22 }
   0x6   : > { %p155_p1 = scmp.eq.s32.totalorder %s154_s29, 0  ;;  %p168_p2 = scmp.eq.s32.totalorder %s1214_s25, 1 }
   0x7   : > { %p173_p3 = scmp.ne.s32.totalorder %s1144_s22, %s1140_s21  ;;  %p174_p4 = scmp.eq.s32.totalorder %s977_s26, 1 }
   0x8   : > { %s1229_s30 = scalar_select %p155_p1, %s1148_s23, %s157_s28  }
   0x9   : > { %p1231_p5 = por %p168_p2, %p167_p0  ;;  %p1235_p6 = por %p174_p4, %p173_p3 }
   0xa   : > { %p980_p7 = scmp.ge.s32.totalorder %s1152_s24, 1  ;;  %p224_p8 = scmp.lt.s32.totalorder %s1152_s24, 3 }
   0xc   : > { %p225_p9 = pnand %p980_p7, %p224_p8 }
   0xd   : > { %s1242_s9 = sshll.u32 (!%p225_p9), %s1214_s25, 2  ;;  %s255_s29 = sand.u32 (!%p225_p9), 1, %s1144_s22  }
   0xe   : > { %228 = sbr.rel (%p225_p9) target bundleno = 514 (0x202), region = 44  ;;  %p263_p10 = scmp.lt.s32.totalorder (!%p225_p9), %s1242_s9, 6 }
   0xf   : > { %s981_s10 = sshll.u32 (!%p225_p9), %s255_s29, 5  ;;  %s1327_s12 = scalar_lea.sflag (!%p225_p9), [#allocation3], %s255_s29 }
  0x10   : > { %s1309_s11 = scalar_lea.vmem (!%p225_p9), [#allocation2], %s981_s10 }
  0x13   : > { %v1154_v0 = vmov 0.0   ;;  %v282_v1 = vld [vmem:[%s1377_s2 + $0x8] sm:$0xff]  ;;  %v1155_v2 = vmov 0   ;;  %v284_v3 = vld [vmem:[%s1377_s2 + $0x18] sm:$0xff]  ;;  %s264_s14 = scalar_select %p263_p10, %s1242_s9, 6  ;;  %v281_v4 = vld [vmem:[%s1377_s2] sm:$0xff] }
  0x14   : > { %393 = vmatprep.mubr.f32.mxu0 %v1154_v0  ;;  %507 = vmatprep.mubr.f32.mxu1 %v1154_v0  ;;  %v283_v5 = vld [vmem:[%s1377_s2 + $0x10] sm:$0xff]  ;;  %vm324_vm0 = vcmask 1043456   ;;  %v287_v10 = vld [vmem:[%s1380_s5] sm:$0x1f]  ;;  %vm311_vm1 = vcmask 31744   ;;  %v278_v12 = vld [vmem:[%s1376_s1 + $0x8] sm:$0xff] }
  0x15   : > { %1057 = vset.pattern.permute.xlu1 %v1155_v2  ;;  %1056 = vset.pattern.permute.xlu0 %v1155_v2  ;;  %s983_s19 = sshll.u32 %s264_s14, 2  ;;  %v277_v11 = vld [vmem:[%s1376_s1] sm:$0xff]  ;;  %v279_v13 = vld [vmem:[%s1376_s1 + $0x10] sm:$0xff]  ;;  %v280_v14 = vld [vmem:[%s1376_s1 + $0x18] sm:$0xff]  ;;  %vm439_vm2 = vcmask 261120   ;;  %s905_s13 = ssub.s32 (%p1231_p5), 7, %s1242_s9 }
  0x16   : > { %296 = vperm.xlu1 %1057, %v282_v1   ;;  %306 = vperm.xlu0 %1056, %v284_v3   ;;  %s266_s28 = scalar_lea.vmem %s1375_s0, %s983_s19  ;;  %v285_v58 = vld [vmem:[%s1378_s3] sm:$0xf]  ;;  %p906_p11 = scmp.lt.s32.totalorder (%p1231_p5), %s905_s13, 4 }
  0x17   : > { %v288_v6 = vld [vmem:[%s266_s28] sm:$0xff]  ;;  %v993_v7 = vld [vmem:[%s266_s28 + $0x8] sm:$0xff] }
  0x18   : > { %v310_v8 = vcombine.high %v288_v6, %v288_v6  ;;  %v620_v9 = vcombine.high %v993_v7, %v993_v7 }
  0x1a   : > { %291 = vperm.xlu1 %1057, %v281_v4   ;;  %301 = vperm.xlu0 %1056, %v283_v5   ;;  %v286_v5 = vld [vmem:[%s1379_s4] sm:$0x1] }
  0x1b   : > { %984 = vmatprep.subr.msk.mxu0 %vm324_vm0, %v310_v8 }
  0x1c   : > { %985 = vmatpush1.msk.msra.mxu0 %vm324_vm0, %v288_v6 }
  0x1d   : > { %986 = vmatmul.mubr.msk.f32.vlgmr.msra.gmra.mxu0 %vm311_vm1, %v277_v11  ;;  %994 = vmatprep.subr.msk.mxu0 %vm324_vm0, %v620_v9 }
  0x1e   : > { %436 = vperm.xlu0 %1056, %v287_v10   ;;  %995 = vmatpush1.msk.msra.mxu0 %vm324_vm0, %v993_v7 }
  0x1f   : > { %399 = vmatprep.mubr.f32.mxu0 %v1154_v0 }
  0x21   : > { %987 = vmatmul.mubr.msk.f32.gmra.mxu0 %vm311_vm1, %v278_v12 }
  0x22   : > { %405 = vmatprep.mubr.f32.mxu0 %v1154_v0 }
  0x25   : > { %988 = vmatmul.mubr.msk.f32.gmra.mxu0 %vm311_vm1, %v279_v13 }
  0x26   : > { %411 = vmatprep.mubr.f32.mxu0 %v1154_v0 }
  0x29   : > { %989 = vmatmul.mubr.msk.f32.gmra.mxu0 %vm311_vm1, %v280_v14 }
  0x2a   : > { %689 = vmatprep.mubr.f32.mxu0 %v1154_v0 }
  0x2d   : > { %996 = vmatmul.mubr.msk.f32.vlgmr.msra.gmra.mxu0 %vm311_vm1, %v277_v11 }
  0x2e   : > { %695 = vmatprep.mubr.f32.mxu0 %v1154_v0 }
  0x31   : > { %997 = vmatmul.mubr.msk.f32.gmra.mxu0 %vm311_vm1, %v278_v12 }
  0x32   : > { %701 = vmatprep.mubr.f32.mxu0 %v1154_v0 }
  0x35   : > { %998 = vmatmul.mubr.msk.f32.gmra.mxu0 %vm311_vm1, %v279_v13 }
  0x36   : > { %707 = vmatprep.mubr.f32.mxu0 %v1154_v0 }
  0x39   : > { %999 = vmatmul.mubr.msk.f32.gmra.mxu0 %vm311_vm1, %v280_v14 }
  0x91   : > { %v307_v19 = vpop.permute.xlu0 %306  ;;  %v297_v22 = vpop.permute.xlu1 %296 }
  0x95   : > { %v302_v24 = vpop.permute.xlu0 %301  ;;  %v292_v31 = vpop.permute.xlu1 %291 }
  0xdd   : > { %v395_v15 = vpop.f32.mrf.mxu0 }
  0xde   : > { %v396_v36 = vadd.f32 %v395_v15, %v292_v31 }
  0xdf   : > { %v397_v16 = vpop.f32.mrf.mxu0 }
  0xe0   : > { %v398_v35 = vadd.f32 %v397_v16, %v292_v31 }
  0xe1   : > { %v401_v17 = vpop.f32.mrf.mxu0 }
  0xe2   : > { %v402_v33 = vadd.f32 %v401_v17, %v297_v22 }
  0xe3   : > { %v403_v18 = vpop.f32.mrf.mxu0 }
  0xe4   : > { %v404_v32 = vadd.f32 %v403_v18, %v297_v22 }
  0xe5   : > { %v407_v20 = vpop.f32.mrf.mxu0 }
  0xe6   : > { %v408_v29 = vadd.f32 %v407_v20, %v302_v24 }
  0xe7   : > { %v409_v21 = vpop.f32.mrf.mxu0 }
  0xe8   : > { %v410_v27 = vadd.f32 %v409_v21, %v302_v24 }
  0xe9   : > { %v413_v23 = vpop.f32.mrf.mxu0 }
  0xea   : > { %v414_v25 = vadd.f32 %v413_v23, %v307_v19 }
  0xeb   : > { %v415_v26 = vpop.f32.mrf.mxu0 }
  0xec   : > { %v416_v28 = vadd.f32 %v415_v26, %v307_v19  ;;  %v1156_v26 = vmov 1966171168  }
  0xed   : > { %v691_v30 = vpop.f32.mrf.mxu0 }
  0xee   : > { %1060 = vtanh.f32 %v416_v28  ;;  %v692_v57 = vadd.f32 %v691_v30, %v292_v31  ;;  %v598_v28 = vlaneseq }
  0xef   : > { %1062 = vtanh.f32 %v414_v25  ;;  %v693_v34 = vpop.f32.mrf.mxu0 }
  0xf0   : > { %1064 = vtanh.f32 %v410_v27  ;;  %v694_v55 = vadd.f32 %v693_v34, %v292_v31  ;;  %v596_v27 = vunpack.c.l.s4 %v1156_v26  ;;  %v599_v30 = vshrl.u32 %v598_v28, 7 }
  0xf1   : > { %1066 = vtanh.f32 %v408_v29  ;;  %v697_v37 = vpop.f32.mrf.mxu0  ;;  %vm1313_vm3 = vcmp.lt.s32.totalorder %v598_v28, 256 }
  0xf2   : > { %1068 = vtanh.f32 %v404_v32  ;;  %v698_v53 = vadd.f32 %v697_v37, %v297_v22  ;;  %v597_v29 = vunpack.c.0.s8 %v596_v27 }
  0xf3   : > { %1070 = vtanh.f32 %v402_v33  ;;  %v699_v38 = vpop.f32.mrf.mxu0 }
  0xf4   : > { %1072 = vtanh.f32 %v398_v35  ;;  %v700_v51 = vadd.f32 %v699_v38, %v297_v22  ;;  %v437_v22 = vpop.permute.xlu0 %436 }
  0xf5   : > { %1074 = vtanh.f32 %v396_v36  ;;  %v703_v39 = vpop.f32.mrf.mxu0  ;;  %v516_v32 = vrot.slane %v437_v22, 4  ;;  %v600_v36 = vsub.s32 %v597_v29, %v599_v30 }
  0xf6   : > { %v704_v49 = vadd.f32 %v703_v39, %v302_v24 }
  0xf7   : > { %v705_v40 = vpop.f32.mrf.mxu0 }
  0xf8   : > { %v706_v46 = vadd.f32 %v705_v40, %v302_v24 }
  0xf9   : > { %v709_v41 = vpop.f32.mrf.mxu0 }
  0xfa   : > { %v710_v43 = vadd.f32 %v709_v41, %v307_v19 }
  0xfb   : > { %v1061_v42 = vpop.eup %1060  ;;  %v711_v44 = vpop.f32.mrf.mxu0 }
  0xfc   : > { %v1063_v45 = vpop.eup %1062  ;;  %v712_v47 = vadd.f32 %v711_v44, %v307_v19  ;;  %467 = vmatprep.subr.mxu1 %v1061_v42  ;;  %v433_v60 = vmul.f32 %v1061_v42, %v1061_v42 }
  0xfd   : > { %v1065_v48 = vpop.eup %1064  ;;  %468 = vmatpush1.msra.mxu1 %v1063_v45  ;;  %v432_v61 = vmul.f32 %v1063_v45, %v1063_v45 }
  0xfe   : > { %v1067_v50 = vpop.eup %1066  ;;  %1076 = vtanh.f32 %v712_v47  ;;  %469 = vmatprep.subr.mxu1 %v1065_v48  ;;  %v431_v62 = vmul.f32 %v1065_v48, %v1065_v48 }
  0xff   : > { %v1069_v52 = vpop.eup %1068  ;;  %1078 = vtanh.f32 %v710_v43  ;;  %470 = vmatpush1.msra.mxu1 %v1067_v50  ;;  %v430_v63 = vmul.f32 %v1067_v50, %v1067_v50 }
 0x100   : > { %v1071_v54 = vpop.eup %1070  ;;  %1080 = vtanh.f32 %v706_v46  ;;  %471 = vmatprep.subr.mxu1 %v1069_v52  ;;  %v429_v1 = vmul.f32 %v1069_v52, %v1069_v52 }
 0x101   : > { %v1073_v56 = vpop.eup %1072  ;;  %1082 = vtanh.f32 %v704_v49  ;;  %472 = vmatpush1.msra.mxu1 %v1071_v54  ;;  %v428_v2 = vmul.f32 %v1071_v54, %v1071_v54 }
 0x102   : > { %v1075_v59 = vpop.eup %1074  ;;  %1084 = vtanh.f32 %v700_v51  ;;  %473 = vmatprep.subr.mxu1 %v1073_v56  ;;  %v427_v3 = vmul.f32 %v1073_v56, %v1073_v56 }
 0x103   : > { %1086 = vtanh.f32 %v698_v53  ;;  %474 = vmatpush1.msra.mxu1 %v1075_v59  ;;  %v426_v4 = vmul.f32 %v1075_v59, %v1075_v59 }
 0x104   : > { %1088 = vtanh.f32 %v694_v55  ;;  %990 = vmatmul.mubr.msk.f32.vlgmr.msra.gmra.mxu1 %vm439_vm2, %v285_v58  ;;  %545 = vmatprep.subr.mxu1 %v433_v60 }
 0x105   : > { %1090 = vtanh.f32 %v692_v57  ;;  %546 = vmatpush1.msra.mxu1 %v432_v61  ;;  %585 = vmatprep.mubr.f32.mxu1 %v1154_v0 }
 0x106   : > { %547 = vmatprep.subr.mxu1 %v431_v62 }
 0x107   : > { %548 = vmatpush1.msra.mxu1 %v430_v63 }
 0x108   : > { %549 = vmatprep.subr.mxu1 %v429_v1 }
 0x109   : > { %550 = vmatpush1.msra.mxu1 %v428_v2 }
 0x10a   : > { %551 = vmatprep.subr.mxu1 %v427_v3 }
 0x10b   : > { %v1077_v6 = vpop.eup %1076  ;;  %552 = vmatpush1.msra.mxu1 %v426_v4 }
 0x10c   : > { %v1079_v7 = vpop.eup %1078  ;;  %991 = vmatmul.mubr.msk.f32.vlgmr.msra.gmra.mxu1 %vm439_vm2, %v286_v5  ;;  %754 = vmatprep.subr.mxu1 %v1077_v6  ;;  %v729_v14 = vmul.f32 %v1077_v6, %v1077_v6 }
 0x10d   : > { %v1081_v8 = vpop.eup %1080  ;;  %755 = vmatpush1.msra.mxu1 %v1079_v7  ;;  %794 = vmatprep.mubr.f32.mxu1 %v1154_v0  ;;  %v728_v15 = vmul.f32 %v1079_v7, %v1079_v7 }
 0x10e   : > { %v1083_v9 = vpop.eup %1082  ;;  %756 = vmatprep.subr.mxu1 %v1081_v8  ;;  %v727_v16 = vmul.f32 %v1081_v8, %v1081_v8 }
 0x10f   : > { %v1085_v10 = vpop.eup %1084  ;;  %757 = vmatpush1.msra.mxu1 %v1083_v9  ;;  %v726_v17 = vmul.f32 %v1083_v9, %v1083_v9 }
 0x110   : > { %v1087_v11 = vpop.eup %1086  ;;  %758 = vmatprep.subr.mxu1 %v1085_v10  ;;  %v725_v18 = vmul.f32 %v1085_v10, %v1085_v10 }
 0x111   : > { %v1089_v12 = vpop.eup %1088  ;;  %759 = vmatpush1.msra.mxu1 %v1087_v11  ;;  %v724_v19 = vmul.f32 %v1087_v11, %v1087_v11 }
 0x112   : > { %v1091_v13 = vpop.eup %1090  ;;  %760 = vmatprep.subr.mxu1 %v1089_v12  ;;  %v723_v20 = vmul.f32 %v1089_v12, %v1089_v12 }
 0x113   : > { %761 = vmatpush1.msra.mxu1 %v1091_v13  ;;  %v722_v21 = vmul.f32 %v1091_v13, %v1091_v13 }
 0x114   : > { %1000 = vmatmul.mubr.msk.f32.vlgmr.msra.gmra.mxu1 %vm439_vm2, %v285_v58  ;;  %828 = vmatprep.subr.mxu1 %v729_v14 }
 0x115   : > { %829 = vmatpush1.msra.mxu1 %v728_v15  ;;  %868 = vmatprep.mubr.f32.mxu1 %v1154_v0 }
 0x116   : > { %830 = vmatprep.subr.mxu1 %v727_v16 }
 0x117   : > { %831 = vmatpush1.msra.mxu1 %v726_v17 }
 0x118   : > { %832 = vmatprep.subr.mxu1 %v725_v18 }
 0x119   : > { %833 = vmatpush1.msra.mxu1 %v724_v19 }
 0x11a   : > { %834 = vmatprep.subr.mxu1 %v723_v20 }
 0x11b   : > { %835 = vmatpush1.msra.mxu1 %v722_v21 }
 0x11c   : > { %1003 = vmatmul.mubr.msk.f32.vlgmr.msra.gmra.mxu1 %vm439_vm2, %v286_v5 }
 0x1c4   : > { %v509_v23 = vpop.f32.mrf.mxu1 }
 0x1c5   : > { %v510_v24 = vadd.f32 %v509_v23, %v437_v22 }
 0x1c6   : > { %v511_v25 = vpop.f32.mrf.mxu1 }
 0x1c7   : > { %514 = vst [vmem:[%s1309_s11] sm:$0xf] %v510_v24  ;;  %v512_v0 = vadd.f32 %v511_v25, %v437_v22 }
 0x1c9   : > { %515 = vst [vmem:[%s1309_s11 + $0x8] sm:$0xf] %v512_v0 }
 0x1cc   : > { %v587_v31 = vpop.f32.mrf.mxu1 }
 0x1cd   : > { %v588_v34 = vadd.f32 %v587_v31, %v516_v32 }
 0x1ce   : > { %v589_v33 = vpop.f32.mrf.mxu1 }
 0x1cf   : > { %v590_v35 = vadd.f32 %v589_v33, %v516_v32 }
 0x1d1   : > { %v594_v37 = vcombine.low %v588_v34, %v590_v35 }
 0x1d3   : > { %v601_v38 = vrot.slane %v594_v37, %v600_v36 }
 0x1d4   : > { %v796_v40 = vpop.f32.mrf.mxu1 }
 0x1d5   : > { %v608_v41 = vrot.slane %v601_v38, %v600_v36  ;;  %v797_v42 = vadd.f32 %v796_v40, %v437_v22 }
 0x1d6   : > { %v798_v43 = vpop.f32.mrf.mxu1 }
 0x1d7   : > { %992 = vst.msk [vmem:[%s1309_s11 + $0x4] ss:$8 sm:$0x3] %vm1313_vm3, %v608_v41  ;;  %1001 = vst [vmem:[%s1309_s11 + $0x10] sm:$0xf] %v797_v42  ;;  %v799_v44 = vadd.f32 %v798_v43, %v437_v22 }
 0x1d9   : > { %1002 = vst [vmem:[%s1309_s11 + $0x18] sm:$0xf] %v799_v44 }
 0x1dc   : > { %v870_v45 = vpop.f32.mrf.mxu1 }
 0x1dd   : > { %v871_v47 = vadd.f32 %v870_v45, %v516_v32 }
 0x1de   : > { %v872_v46 = vpop.f32.mrf.mxu1 }
 0x1df   : > { %v873_v48 = vadd.f32 %v872_v46, %v516_v32 }
 0x1e1   : > { %v877_v49 = vcombine.low %v871_v47, %v873_v48 }
 0x1e3   : > { %v884_v50 = vrot.slane %v877_v49, %v600_v36  ;;  %903 = sbr.rel (!%p1231_p5) target bundleno = 514 (0x202), region = 48 }
 0x1e5   : > { %v891_v51 = vrot.slane %v884_v50, %v600_v36 }
 0x1e7   : > { %1004 = vst.msk [vmem:[%s1309_s11 + $0x14] ss:$8 sm:$0x3] %vm1313_vm3, %v891_v51 }
 0x1e8   : > { %s1391_s13 = smov (!%p906_p11, %s905_s13), 4 }
 0x1e9   : > { %s1332_s14 = sshll.u32 %s1391_s13, 7 }
 0x1ea   : > { %s910_s15 = ssub.s32 512, %s1332_s14 }
 0x1eb   : > { %911 = vsyncadd %s1327_s12, %s910_s15  ;;  %p1008_p12 = scmp.ne.s32.totalorder %s1332_s14, 0  ;;  %s1014_s16 = sshll.u32 %s1214_s25, 9 }
 0x1ec   : > { %s914_s18 = scalar_lea.hbm %s1381_s6, %s1014_s16  ;;  %s917_s19 = sshll.u32 %s1309_s11, 4  ;;  %s918_s19 = int_to_ptr.vmem [resolvable:$true] %s917_s19 }
 0x1ed   : > { %s1092_s9 = scalar_lea.vmem %s918_s19, %s1332_s14  ;;  %s1157_s20 = smov [#allocation2]  }
 0x1ee   : > { %p1093_p13 = scmp.ne.s32.totalorder %s918_s19, %s1092_s9  ;;  %s1096_s26 = sshll.u32 %s1157_s20, 4  ;;  %s1097_s26 = int_to_ptr.vmem [resolvable:$false] %s1096_s26 }
 0x1ef   : > { %s1098_s28 = scalar_lea.vmem %s1097_s26, 1024  ;;  %p1099_p2 = scmp.lt.s32.totalorder %s918_s19, %s1097_s26 }
 0x1f0   : > { %p1094_p0 = pnand %p1093_p13, %p1008_p12  ;;  %p1100_p3 = scmp.lt.s32.totalorder %s1098_s28, %s1092_s9 }
 0x1f2   : > { %p1095_p1 = pneg %p1094_p0  ;;  %p1101_p4 = por %p1100_p3, %p1099_p2 }
 0x1f4   : > { %p1102_p5 = pnand %p1101_p4, %p1095_p1 }
 0x1f6   : > { %1105 = shalt.err (!%p1102_p5)
}
 0x1f7   : > { %s1106_s25 = scalar_lea.hbm %s914_s18, %s1332_s14  ;;  %s1110_s11 = scalar_lea.hbm %s1381_s6, 896 }
 0x1f8   : > { %p1107_p7 = scmp.ne.s32.totalorder %s914_s18, %s1106_s25  ;;  %p1111_p10 = scmp.lt.s32.totalorder %s914_s18, %s1381_s6 }
 0x1f9   : > { %p1112_p11 = scmp.lt.s32.totalorder %s1110_s11, %s1106_s25 }
 0x1fa   : > { %p1108_p8 = pnand %p1107_p7, %p1008_p12 }
 0x1fb   : > { %p1113_p13 = por %p1112_p11, %p1111_p10 }
 0x1fc   : > { %p1109_p9 = pneg %p1108_p8 }
 0x1fe   : > { %p1114_p0 = pnand %p1113_p13, %p1109_p9 }
 0x200   : > { %1117 = shalt.err (!%p1114_p0)
}
 0x201   : > { %920 = dma.vmem_to_hbm [thread:$0]  (%p1008_p12), %s918_s19, %s1332_s14, %s914_s18, %s1327_s12  }
 0x202 PF: > { %p1020_p1 = scmp.ge.s32.totalorder %s1152_s24, 2  ;;  %s929_s16 = sand.u32 1, %s1140_s21  }
 0x203   : > { %s930_s17 = scalar_lea.sflag [#allocation3], %s929_s16 }
 0x204   : > { %p1017_p2 = pnand %p1020_p1, %p1235_p6 }
 0x206   : > { %p1018_p3 = pneg %p1017_p2 }
 0x208   : > { %1135 = dma.done.wait (%p1018_p3), %s930_s17, 512  }
 0x209   : > { %1137 = vsyncadd (%p1018_p3), %s930_s17, 4294966784  ;;  %p16_p4 = scmp.ge.s32.totalorder %s1218_s27, 4   ;;  %s1386_s21 = smov %s1144_s22 }
 0x20a   : > { %s1387_s22 = smov %s1148_s23  ;;  %s1388_s23 = smov %s1229_s30 }
 0x20b   : > { %s1389_s24 = smov %s1218_s27  ;;  %18 = sbr.rel (!%p16_p4) target bundleno = 3 (0x3), region = 83 }
 0x210   :  { %935 = vsyncpa [#allocation3], 1 }
 0x211   :  { %937 = vsyncpa [#allocation3 + $0x1], 1 }

</bundles_post_ra>
